<compile_context>
chip_gen: v7x
topology: tpu7x:2x2x1
jax: 0.10.0
libtpu: 0.0.40
codegen_flags: <defaults>
</compile_context>

<pallas_src>
import jax
import jax.numpy as jnp
from jax.experimental import pallas as pl
from jax.experimental.pallas import tpu as pltpu

# ---------------- model hyper-parameters (small, consistent with forward) ----
B = 2              # batch
T = 16             # sequence length (tokens)
V = 30             # vocab_size
E = 16             # emb_size
C = 8              # out_channels
KH = 3             # kernel_heights
STRIDE = 1         # conv stride
PAD = 1            # conv padding along the time axis (width padding is 0)
O = 4              # output_size
PADDING_IDX = 0

assert STRIDE == 1, "fused embedding+conv formulation below assumes stride == 1"
T_OUT = (T + 2 * PAD - KH) // STRIDE + 1   # conv output length along time (= 16)

# ---------------- fused-kernel layout constants ------------------------------
V_PAD = 32                     # vocab rows padded to a power of two (rows V..31 are zero)
PAD_ID = V_PAD - 1             # dedicated always-zero row -> exact Conv2d zero padding
TP = 24                        # per-batch time rows, padded to a multiple of 8 (>= T + 2*PAD)
K_PAD = 128                    # fused matmul K dim: KH*V_PAD (=96) padded to a full lane group
LANES = 128                    # lane-dense minor dimension everywhere
ROW_CONVB = K_PAD              # slab row holding the conv bias
ROW_FCW = ROW_CONVB + 8        # slab rows holding fc weight (C rows)
ROW_FCB = ROW_FCW + C          # slab row holding fc bias
SLAB_ROWS = ((ROW_FCB + 1 + 7) // 8) * 8   # = 152, multiple of 8

assert T + 2 * PAD <= TP and T_OUT <= TP and KH * V_PAD <= K_PAD


# ---------------- Pallas kernel ----------------------------------------------
def cnn_kernel(tgt_ref, slab_ref, out_ref):
    # tgt_ref : (B*TP, K_PAD) int32 — per-lane one-hot targets: lane kh*V_PAD + v is "hot"
    #           iff token at padded time position (t + kh) equals v (built in the wrapper,
    #           lanes >= KH*V_PAD hold -1 and never match).
    # slab_ref: (SLAB_ROWS, 128) f32 packed parameters (one DMA):
    #           rows [0, K_PAD)          : stacked M_kh = emb_w @ conv_w[:,0,kh,:].T (lanes 0..C-1)
    #           row  ROW_CONVB           : conv bias      (lanes 0..C-1)
    #           rows [ROW_FCW, ROW_FCW+C): fc weight^T    (lanes 0..O-1)
    #           row  ROW_FCB             : fc bias        (lanes 0..O-1)

    # ---- embedding lookup + Conv2d over all taps/time-steps/batches: ONE matmul ----
    lane = jax.lax.broadcasted_iota(jnp.int32, (B * TP, K_PAD), 1)
    onehot = (lane == tgt_ref[...]).astype(jnp.float32)              # (B*TP, K_PAD)
    # NOTE: any token id outside [0, V) yields an all-zero one-hot row (a real gather would
    # wrap/clamp) — benign for valid inputs, documented per review.
    conv = jnp.dot(onehot, slab_ref[0:K_PAD, :],
                   preferred_element_type=jnp.float32)               # (B*TP, 128); lanes >= C are 0

    # ---- global max-pool over time, per batch (8-aligned sublane windows) ----
    pooled = jnp.concatenate(
        [jnp.max(conv[b * TP:b * TP + T_OUT, :], axis=0, keepdims=True)
         for b in range(B)],
        axis=0)                                                      # (B, 128)

    # ---- conv bias + ReLU applied after the pool (both commute with max over time) ----
    act = jnp.maximum(pooled + slab_ref[ROW_CONVB:ROW_CONVB + 1, :], 0.0)

    # ---- Dropout(0.3) is identity at inference ----
    # TODO(synk): training-mode dropout (pltpu.prng_* Bernoulli mask) not implemented.

    # ---- final Linear, lane-dense (B, 128) output ----
    out = jnp.dot(act[:, 0:C], slab_ref[ROW_FCW:ROW_FCW + C, :],
                  preferred_element_type=jnp.float32)
    out_ref[...] = out + slab_ref[ROW_FCB:ROW_FCB + 1, :]


# ---------------- init-time parameter packing (hoisted out of per-call path) --
def prepare_params(params):
    """Pack all weights into ONE f32 VMEM slab; called once at init, not per forward."""
    emb_w, conv_w, conv_b, fc_w, fc_b = params
    emb_pad = jnp.zeros((V_PAD, E), jnp.float32).at[:V].set(emb_w)   # rows V..V_PAD-1 are zero
    # M[kh, v, c] = sum_e emb_pad[v, e] * conv_w[c, 0, kh, e]   (embedding+conv fusion)
    m = jnp.einsum('ve,cke->kvc', emb_pad, conv_w[:, 0],
                   precision=jax.lax.Precision.HIGHEST)              # (KH, V_PAD, C)
    slab = jnp.zeros((SLAB_ROWS, LANES), jnp.float32)
    slab = slab.at[0:KH * V_PAD, 0:C].set(m.reshape(KH * V_PAD, C))
    slab = slab.at[ROW_CONVB, 0:C].set(conv_b)
    slab = slab.at[ROW_FCW:ROW_FCW + C, 0:O].set(fc_w.T)
    slab = slab.at[ROW_FCB, 0:O].set(fc_b)
    return slab


def make_targets(x):
    """Per-call index plumbing: padded, tap-expanded token ids for the one-hot compare."""
    xp = jnp.full((B, TP + KH - 1), PAD_ID, jnp.int32)
    xp = xp.at[:, PAD:PAD + T].set(x.astype(jnp.int32))              # [pad, tokens..., pad, filler]
    taps = jnp.stack([xp[:, kh:kh + TP] for kh in range(KH)], axis=-1)   # (B, TP, KH)
    taps = taps + jnp.arange(KH, dtype=jnp.int32) * V_PAD                # per-tap lane-block offset
    tgt = jnp.repeat(taps, V_PAD, axis=-1).reshape(B * TP, KH * V_PAD)   # (B*TP, KH*V_PAD)
    tgt = jnp.pad(tgt, ((0, 0), (0, K_PAD - KH * V_PAD)), constant_values=-1)
    return tgt                                                           # (B*TP, K_PAD) int32


def cnn_forward(x, slab):
    targets = make_targets(x)
    vmem = pl.BlockSpec(memory_space=pltpu.MemorySpace.VMEM)
    # Single program, fully VMEM-resident (< 110 KiB total).  For throughput serving on
    # v7x, add a leading batch grid axis with dimension_semantics=("parallel",) to use
    # both TensorCores; at latency-critical B=2 a single program is fastest.
    out = pl.pallas_call(
        cnn_kernel,
        out_shape=jax.ShapeDtypeStruct((B, LANES), jnp.float32),
        in_specs=[vmem, vmem],
        out_specs=vmem,
    )(targets, slab)
    return out[:, :O]


# ---------------- deterministic parameter init (glue, plain JAX) -------------
def init_params(key):
    ks = jax.random.split(key, 5)

    emb_w = jax.random.normal(ks[0], (V, E), jnp.float32)
    emb_w = emb_w.at[PADDING_IDX].set(0.0)            # padding_idx row is zero

    k_conv = (1.0 / (1 * KH * E)) ** 0.5              # PyTorch Conv2d default init bound
    conv_w = jax.random.uniform(ks[1], (C, 1, KH, E), jnp.float32, -k_conv, k_conv)
    conv_b = jax.random.uniform(ks[2], (C,), jnp.float32, -k_conv, k_conv)

    k_fc = (1.0 / C) ** 0.5                           # PyTorch Linear default init bound
    fc_w = jax.random.uniform(ks[3], (O, C), jnp.float32, -k_fc, k_fc)
    fc_b = jax.random.uniform(ks[4], (O,), jnp.float32, -k_fc, k_fc)

    return emb_w, conv_w, conv_b, fc_w, fc_b


# ---------------- pure-JAX reference (for correctness check) -----------------
def cnn_reference(x, params):
    emb_w, conv_w, conv_b, fc_w, fc_b = params
    emb = emb_w[x]                                              # (B, T, E) gather
    emb_p = jnp.pad(emb, ((0, 0), (PAD, PAD), (0, 0)))          # (B, T+2P, E)
    patches = jnp.stack([emb_p[:, t:t + KH, :] for t in range(T_OUT)], axis=1)  # (B,T_OUT,KH,E)
    conv = jnp.einsum('btke,cke->bct', patches, conv_w[:, 0],
                      precision=jax.lax.Precision.HIGHEST) + conv_b[None, :, None]
    act = jnp.maximum(conv, 0.0)                                # (B, C, T_OUT)
    pooled = jnp.max(act, axis=2)                               # (B, C)
    return jnp.dot(pooled, fc_w.T,
                   precision=jax.lax.Precision.HIGHEST) + fc_b  # (B, O)


if __name__ == "__main__":
    key = jax.random.PRNGKey(0)
    kx, kp = jax.random.split(key)
    x = jax.random.randint(kx, (B, T), 0, V, dtype=jnp.int32)
    params = init_params(kp)
    slab = prepare_params(params)       # one-time packing, outside the per-call path

    out = cnn_forward(x, slab)
    out = jax.block_until_ready(out)

    ref = cnn_reference(x, params)
    assert out.shape == (B, O)
    assert jnp.allclose(out, ref, atol=1e-4, rtol=1e-4), (out, ref)

    print("KERNEL_OK")
</pallas_src>

<mosaic_0001>
module attributes {stable_mosaic.version = 11 : i64} {
  func.func @cnn_kernel(%arg0: memref<48x128xi32, #tpu.memory_space<vmem>>, %arg1: memref<152x128xf32, #tpu.memory_space<vmem>>, %arg2: memref<2x128xf32, #tpu.memory_space<vmem>>) attributes {dimension_semantics = [], scalar_prefetch = 0 : i64, scratch_operands = 0 : i64, tpu.core_type = #tpu.core_type<tc>} {
    %0 = tpu.iota {dimensions = array<i32: 1>} : vector<48x128xi32>
    %c0 = arith.constant 0 : index
    %c0_0 = arith.constant 0 : index
    %1 = vector.load %arg0[%c0, %c0_0] : memref<48x128xi32, #tpu.memory_space<vmem>>, vector<48x128xi32>
    %2 = arith.cmpi eq, %0, %1 : vector<48x128xi32>
    %3 = arith.extui %2 : vector<48x128xi1> to vector<48x128xi32>
    %4 = arith.sitofp %3 : vector<48x128xi32> to vector<48x128xf32>
    %c0_1 = arith.constant 0 : index
    %c0_2 = arith.constant 0 : index
    %5 = vector.load %arg1[%c0_1, %c0_2] : memref<152x128xf32, #tpu.memory_space<vmem>>, vector<128x128xf32>
    %cst = arith.constant dense<0.000000e+00> : vector<48x128xf32>
    %6 = tpu.matmul %4, %5, %cst {dimension_numbers = #tpu.dot_dimension_numbers<[1], [0], [0], [1], [0, 0, 1, 1], [], []>} : vector<48x128xf32>, vector<128x128xf32>, vector<48x128xf32> -> vector<48x128xf32>
    %7 = vector.extract_strided_slice %6 {offsets = [0, 0], sizes = [16, 128], strides = [1, 1]} : vector<48x128xf32> to vector<16x128xf32>
    %cst_3 = arith.constant dense<0xFF800000> : vector<128xf32>
    %8 = vector.multi_reduction <maximumf>, %7, %cst_3 [0] : vector<16x128xf32> to vector<128xf32>
    %9 = vector.shape_cast %8 : vector<128xf32> to vector<1x128xf32>
    %10 = vector.extract_strided_slice %6 {offsets = [24, 0], sizes = [16, 128], strides = [1, 1]} : vector<48x128xf32> to vector<16x128xf32>
    %cst_4 = arith.constant dense<0xFF800000> : vector<128xf32>
    %11 = vector.multi_reduction <maximumf>, %10, %cst_4 [0] : vector<16x128xf32> to vector<128xf32>
    %12 = vector.shape_cast %11 : vector<128xf32> to vector<1x128xf32>
    %13 = tpu.concatenate %9, %12 in 0 : vector<1x128xf32>, vector<1x128xf32> -> vector<2x128xf32>
    %c128 = arith.constant 128 : index
    %c0_5 = arith.constant 0 : index
    %14 = vector.load %arg1[%c128, %c0_5] : memref<152x128xf32, #tpu.memory_space<vmem>>, vector<1x128xf32>
    %15 = vector.broadcast %14 : vector<1x128xf32> to vector<2x128xf32>
    %16 = arith.addf %13, %15 : vector<2x128xf32>
    %cst_6 = arith.constant 0.000000e+00 : f32
    %17 = vector.broadcast %cst_6 : f32 to vector<2x128xf32>
    %18 = arith.maximumf %16, %17 : vector<2x128xf32>
    %19 = vector.extract_strided_slice %18 {offsets = [0, 0], sizes = [2, 8], strides = [1, 1]} : vector<2x128xf32> to vector<2x8xf32>
    %c136 = arith.constant 136 : index
    %c0_7 = arith.constant 0 : index
    %20 = vector.load %arg1[%c136, %c0_7] : memref<152x128xf32, #tpu.memory_space<vmem>>, vector<8x128xf32>
    %cst_8 = arith.constant dense<0.000000e+00> : vector<2x128xf32>
    %21 = tpu.matmul %19, %20, %cst_8 {dimension_numbers = #tpu.dot_dimension_numbers<[1], [0], [0], [1], [0, 0, 1, 1], [], []>} : vector<2x8xf32>, vector<8x128xf32>, vector<2x128xf32> -> vector<2x128xf32>
    %c144 = arith.constant 144 : index
    %c0_9 = arith.constant 0 : index
    %22 = vector.load %arg1[%c144, %c0_9] : memref<152x128xf32, #tpu.memory_space<vmem>>, vector<1x128xf32>
    %23 = vector.broadcast %22 : vector<1x128xf32> to vector<2x128xf32>
    %24 = arith.addf %21, %23 : vector<2x128xf32>
    %c0_10 = arith.constant 0 : index
    %c0_11 = arith.constant 0 : index
    %25 = vector.load %arg2[%c0_10, %c0_11] : memref<2x128xf32, #tpu.memory_space<vmem>>, vector<2x128xf32>
    tpu.vector_store %arg2[%c0_10, %c0_11], %24 {strides = array<i32>} : memref<2x128xf32, #tpu.memory_space<vmem>>, vector<2x128xf32>,
    return
  }
}

</mosaic_0001>

<bundles_post_ra>
// kernel: tpu_custom_call.1
= control target key start
LH: loop header
LB: loop body
LE: loop exit
PB: predicated region body
PF: predicated region fallthrough
CT: control target
= control target key end

     0   :  { %7 = vsyncpa [#allocation3], 0  ;;  %s575_s0 = inlined_call_operand.hbm [shape: s32[48,128], index: 0, kind: input, shape index: {}]   ;;  %s576_s1 = inlined_call_operand.hbm [shape: f32[152,128], index: 1, kind: input, shape index: {}]   ;;  %s577_s2 = inlined_call_operand.hbm [shape: f32[2,128], index: 2, kind: output, shape index: {}]  }
   0x1   :  { %8 = vsyncpa [#allocation6], 0 }
   0x2   :  { %9 = vsyncpa [#allocation4], 0  ;;  %s508_s9 = smov [#allocation2]   ;;  %s436_s13 = scalar_lea.hbm %s575_s0, 768 }
   0x3   :  { %s15_s10 = sshll.u32 %s508_s9, 4  ;;  %p437_p0 = scmp.ne.s32.totalorder %s575_s0, %s436_s13  ;;  %s16_s10 = int_to_ptr.vmem [resolvable:$true] %s15_s10 }
   0x4   :  { %p440_p1 = scmp.lt.u32.totalorder %s436_s13, %s575_s0 }
   0x6   :  { %p442_p2 = pnand %p440_p1, %p437_p0 }
   0x8   :  { %445 = shalt.err (!%p442_p2)
}
   0x9   :  { %s446_s18 = scalar_lea.vmem %s16_s10, 768  ;;  %p451_p4 = scmp.lt.s32.totalorder %s16_s10, %s16_s10 }
   0xa   :  { %p447_p3 = scmp.ne.s32.totalorder %s16_s10, %s446_s18  ;;  %p452_p5 = scmp.lt.s32.totalorder %s446_s18, %s446_s18 }
   0xc   :  { %p453_p6 = por %p452_p5, %p451_p4 }
   0xe   :  { %p454_p7 = pnand %p453_p6, %p447_p3 }
  0x10   :  { %457 = shalt.err (!%p454_p7)
}
  0x11   :  { %s509_s19 = smov 128   ;;  %s510_s20 = smov 8  }
  0x12   :  { %21 = dma.hbm_to_vmem [thread:$0]  %s575_s0, 768, %s16_s10, [#allocation3], %s509_s19, %s509_s19, %s510_s20  }
  0x13   :  { %s511_s23 = smov [#allocation5]   ;;  %s458_s27 = scalar_lea.hbm %s576_s1, 2432 }
  0x14   :  { %s27_s24 = sshll.u32 %s511_s23, 4  ;;  %p459_p8 = scmp.ne.s32.totalorder %s576_s1, %s458_s27  ;;  %s28_s24 = int_to_ptr.vmem [resolvable:$true] %s27_s24 }
  0x15   :  { %p462_p9 = scmp.lt.u32.totalorder %s458_s27, %s576_s1 }
  0x17   :  { %p464_p10 = pnand %p462_p9, %p459_p8 }
  0x19   :  { %467 = shalt.err (!%p464_p10)
}
  0x1a   :  { %s468_s4 = scalar_lea.vmem %s28_s24, 2432  ;;  %p473_p12 = scmp.lt.s32.totalorder %s28_s24, %s28_s24 }
  0x1b   :  { %p469_p11 = scmp.ne.s32.totalorder %s28_s24, %s468_s4  ;;  %p474_p13 = scmp.lt.s32.totalorder %s468_s4, %s468_s4 }
  0x1d   :  { %p475_p0 = por %p474_p13, %p473_p12 }
  0x1f   :  { %p476_p1 = pnand %p475_p0, %p469_p11 }
  0x21   :  { %479 = shalt.err (!%p476_p1)
}
  0x22   :  { %33 = dma.hbm_to_vmem [thread:$0]  %s576_s1, 2432, %s28_s24, [#allocation6], %s509_s19, %s509_s19, %s510_s20  }
  0x23   :  { %502 = dma.done.wait [#allocation3], 768  }
  0x24   :  { %503 = vsyncadd [#allocation3], 4294966528 }
  0x25   :  { %504 = dma.done.wait [#allocation6], 2432  }
  0x26   :  { %505 = vsyncadd [#allocation6], 4294964864  ;;  %v40_v0 = vlaneseq  ;;  %v66_v1 = vld [vmem:[#allocation5] sm:$0xff]  ;;  %v67_v2 = vld [vmem:[#allocation5 + $0x8] sm:$0xff]  ;;  %v512_v15 = vmov 1.0   ;;  %v513_v34 = vmov 0.0  }
  0x27   :  { %v68_v3 = vld [vmem:[#allocation5 + $0x10] sm:$0xff]  ;;  %v380_v4 = vpack.c.bf16 %v67_v2, %v66_v1  ;;  %v69_v5 = vld [vmem:[#allocation5 + $0x18] sm:$0xff]  ;;  %v70_v7 = vld [vmem:[#allocation5 + $0x20] sm:$0xff]  ;;  %vm514_vm6 = vmmov 0   ;;  %vm189_vm7 = vcmask 1040384   ;;  %vm204_vm8 = vcmask 64512  }
  0x28   :  { %v384_v6 = vpack.c.bf16 %v69_v5, %v68_v3  ;;  %v71_v8 = vld [vmem:[#allocation5 + $0x28] sm:$0xff]  ;;  %v555_v9 = vand.u32 127, %v40_v0  ;;  %v42_v11 = vld [vmem:[#allocation2] sm:$0xff]  ;;  %v73_v13 = vld [vmem:[#allocation5 + $0x38] sm:$0xff]  ;;  %s515_s1 = smov [#allocation7]  }
  0x29   :  { %381 = vmatprep.subr.bf16.mxu0 %v380_v4  ;;  %412 = vmatprep.subr.bf16.mxu1 %v380_v4  ;;  %v388_v10 = vpack.c.bf16 %v71_v8, %v70_v7  ;;  %v72_v12 = vld [vmem:[#allocation5 + $0x30] sm:$0xff]  ;;  %v74_v17 = vld [vmem:[#allocation5 + $0x40] sm:$0xff]  ;;  %v75_v18 = vld [vmem:[#allocation5 + $0x48] sm:$0xff]  ;;  %s285_s6 = sshll.u32 %s515_s1, 4  ;;  %s286_s6 = int_to_ptr.vmem [resolvable:$true] %s285_s6 }
  0x2a   :  { %383 = vmatpush3.bf16.msra.mxu0 %v380_v4  ;;  %420 = vmatpush3.bf16.msra.mxu1 %v380_v4  ;;  %vm48_vm0 = vcmp.eq.s32.totalorder %v555_v9, %v42_v11  ;;  %v46_v14 = vld [vmem:[#allocation2 + $0x20] sm:$0xff]  ;;  %v392_v16 = vpack.c.bf16 %v73_v13, %v72_v12  ;;  %v396_v19 = vpack.c.bf16 %v75_v18, %v74_v17  ;;  %v77_v21 = vld [vmem:[#allocation5 + $0x58] sm:$0xff]  ;;  %v78_v23 = vld [vmem:[#allocation5 + $0x60] sm:$0xff]  ;;  %s480_s7 = scalar_lea.vmem %s286_s6, 32  ;;  %p485_p3 = scmp.lt.s32.totalorder %s286_s6, %s286_s6 }
  0x2b   :  { %385 = vmatprep.subr.bf16.mxu0 %v384_v6  ;;  %413 = vmatprep.subr.bf16.mxu1 %v384_v6  ;;  %vm52_vm1 = vcmp.eq.s32.totalorder %v555_v9, %v46_v14  ;;  %v76_v20 = vld [vmem:[#allocation5 + $0x50] sm:$0xff]  ;;  %v79_v24 = vld [vmem:[#allocation5 + $0x68] sm:$0xff]  ;;  %v81_v27 = vld [vmem:[#allocation5 + $0x78] sm:$0xff]  ;;  %p481_p2 = scmp.ne.s32.totalorder %s286_s6, %s480_s7  ;;  %p486_p4 = scmp.lt.s32.totalorder %s480_s7, %s480_s7 }
  0x2c   :  { %366 = vmatprep.mubr.msk.f32.mxu0 %vm48_vm0, %v512_v15  ;;  %372 = vmatprep.mubr.msk.f32.mxu1 %vm52_vm1, %v512_v15  ;;  %v400_v22 = vpack.c.bf16 %v77_v21, %v76_v20  ;;  %v404_v25 = vpack.c.bf16 %v79_v24, %v78_v23  ;;  %v80_v26 = vld [vmem:[#allocation5 + $0x70] sm:$0xff]  ;;  %v43_v29 = vld [vmem:[#allocation2 + $0x8] sm:$0xff]  ;;  %v44_v31 = vld [vmem:[#allocation2 + $0x10] sm:$0xff] }
  0x2d   :  { %v408_v28 = vpack.c.bf16 %v81_v27, %v80_v26  ;;  %v47_v30 = vld [vmem:[#allocation2 + $0x28] sm:$0xff]  ;;  %vm49_vm2 = vcmp.eq.s32.totalorder %v555_v9, %v43_v29  ;;  %vm50_vm4 = vcmp.eq.s32.totalorder %v555_v9, %v44_v31  ;;  %v45_v32 = vld [vmem:[#allocation2 + $0x18] sm:$0xff]  ;;  %v307_v55 = vld [vmem:[#allocation5 + $0x80] ss:$0 sm:$0xff]  ;;  %p487_p5 = por %p486_p4, %p485_p3 }
  0x2e   :  { %387 = vmatpush3.bf16.msra.mxu0 %v384_v6  ;;  %421 = vmatpush3.bf16.msra.mxu1 %v384_v6  ;;  %vm53_vm3 = vcmp.eq.s32.totalorder %v555_v9, %v47_v30  ;;  %vm51_vm5 = vcmp.eq.s32.totalorder %v555_v9, %v45_v32  ;;  %v198_v33 = vld [vmem:[#allocation5 + $0x88] sm:$0xff]  ;;  %v308_v59 = vld [vmem:[#allocation5 + $0x90] ss:$0 sm:$0xff] }
  0x2f   :  { %389 = vmatprep.subr.bf16.mxu0 %v388_v10  ;;  %414 = vmatprep.subr.bf16.mxu1 %v388_v10  ;;  %p488_p6 = pnand %p487_p5, %p481_p2 }
  0x32   :  { %391 = vmatpush3.bf16.msra.mxu0 %v388_v10  ;;  %422 = vmatpush3.bf16.msra.mxu1 %v388_v10 }
  0x33   :  { %393 = vmatprep.subr.bf16.mxu0 %v392_v16  ;;  %415 = vmatprep.subr.bf16.mxu1 %v392_v16 }
  0x36   :  { %395 = vmatpush3.bf16.msra.mxu0 %v392_v16  ;;  %423 = vmatpush3.bf16.msra.mxu1 %v392_v16 }
  0x37   :  { %397 = vmatprep.subr.bf16.mxu0 %v396_v19  ;;  %416 = vmatprep.subr.bf16.mxu1 %v396_v19 }
  0x3a   :  { %399 = vmatpush3.bf16.msra.mxu0 %v396_v19  ;;  %424 = vmatpush3.bf16.msra.mxu1 %v396_v19 }
  0x3b   :  { %401 = vmatprep.subr.bf16.mxu0 %v400_v22  ;;  %417 = vmatprep.subr.bf16.mxu1 %v400_v22 }
  0x3e   :  { %403 = vmatpush3.bf16.msra.mxu0 %v400_v22  ;;  %425 = vmatpush3.bf16.msra.mxu1 %v400_v22 }
  0x3f   :  { %405 = vmatprep.subr.bf16.mxu0 %v404_v25  ;;  %418 = vmatprep.subr.bf16.mxu1 %v404_v25 }
  0x42   :  { %407 = vmatpush3.bf16.msra.mxu0 %v404_v25  ;;  %426 = vmatpush3.bf16.msra.mxu1 %v404_v25 }
  0x43   :  { %409 = vmatprep.subr.bf16.mxu0 %v408_v28  ;;  %419 = vmatprep.subr.bf16.mxu1 %v408_v28 }
  0x46   :  { %411 = vmatpush3.bf16.msra.mxu0 %v408_v28  ;;  %427 = vmatpush3.bf16.msra.mxu1 %v408_v28 }
  0x47   :  { %375 = vmatprep.subr.mxu1 %v513_v34 }
  0x49   :  { %367 = vmatmul.mubr.msk.f32.vlgmr.msra.gmra.mrb[0].mxu0 %vm49_vm2, %v512_v15  ;;  %373 = vmatmul.mubr.msk.f32.vlgmr.msra.gmra.mrb[0].mxu1 %vm53_vm3, %v512_v15 }
  0x4a   :  { %369 = vmatprep.mubr.msk.f32.mxu0 %vm50_vm4, %v512_v15  ;;  %377 = vmatprep.mubr.msk.f32.mxu1 %vm514_vm6, %v513_v34 }
  0x4b   :  { %376 = vmatpush3.msra.mxu1 %v198_v33 }
  0x4d   :  { %370 = vmatmul.mubr.msk.f32.gmra.mrb[2].mxu0 %vm51_vm5, %v512_v15 }
 0x11c   :  { %v368_v35 = vpop.f32.mrb[0].mxu0  ;;  %v374_v36 = vpop.f32.mrb[0].mxu1 }
 0x11d   :  { %v148_v37 = vpop.f32.mrb[1].mxu0  ;;  %v167_v38 = vpop.f32.mrb[1].mxu1 }
 0x11e   :  { %v175_v39 = vmax.f32 %v148_v37, %v368_v35 }
 0x120   :  { %v176_v40 = vrot.slane %v175_v39, 4  ;;  %v371_v41 = vpop.f32.mrb[2].mxu0 }
 0x121   :  { %v182_v42 = vmax.f32 %v371_v41, %v167_v38  ;;  %v158_v43 = vpop.f32.mrb[3].mxu0 }
 0x122   :  { %v177_v44 = vmax.f32 %v175_v39, %v176_v40 }
 0x123   :  { %v183_v45 = vrot.slane %v182_v42, 4 }
 0x124   :  { %v178_v46 = vrot.slane %v177_v44, 2 }
 0x125   :  { %v184_v47 = vmax.f32 %v182_v42, %v183_v45 }
 0x126   :  { %v179_v48 = vmax.f32 %v177_v44, %v178_v46 }
 0x127   :  { %v185_v49 = vrot.slane %v184_v47, 2 }
 0x128   :  { %v180_v50 = vrot.slane %v179_v48, 1 }
 0x129   :  { %v186_v51 = vmax.f32 %v184_v47, %v185_v49 }
 0x12a   :  { %v181_v53 = vmax.f32 %v179_v48, %v180_v50 }
 0x12b   :  { %v187_v52 = vrot.slane %v186_v51, 1 }
 0x12d   :  { %v188_v54 = vmax.f32 %v186_v51, %v187_v52 }
 0x12f   :  { %v190_v56 = vsel %vm189_vm7, %v181_v53, %v188_v54 }
 0x130   :  { %v196_v57 = vadd.f32 %v307_v55, %v190_v56 }
 0x132   :  { %v197_v58 = vmax.f32 %v196_v57, 0.0 }
 0x134   :  { %378 = vmatmul.mubr.msk.f32.vlgmr.msra.gmra.mrb[2].mxu1 %vm204_vm8, %v197_v58 }
 0x207   :  { %v274_v60 = vpop.f32.mrb[2].mxu1 }
 0x208   :  { %v275_v61 = vadd.f32 %v308_v59, %v274_v60  ;;  %v379_v62 = vpop.f32.mrb[3].mxu1 }
 0x20a   :  { %278 = vst [vmem:[#allocation7] sm:$0x3] %v275_v61 }
 0x20b   :  { %491 = shalt.err (!%p488_p6)
}
 0x20c   :  { %s492_s10 = scalar_lea.hbm %s577_s2, 32 }
 0x20d   :  { %p493_p7 = scmp.ne.s32.totalorder %s577_s2, %s492_s10  ;;  %p496_p8 = scmp.lt.u32.totalorder %s492_s10, %s577_s2 }
 0x20f   :  { %p498_p9 = pnand %p496_p8, %p493_p7 }
 0x211   :  { %501 = shalt.err (!%p498_p9)
}
 0x212   :  { %288 = dma.vmem_to_hbm [thread:$0]  %s286_s6, 32, %s577_s2, [#allocation4]  }
 0x213   :  { %506 = dma.done.wait [#allocation4], 32  }
 0x214   :  { %507 = vsyncadd [#allocation4], 4294967264 }
 0x215   :  { %292 = vsyncpa [#allocation3], 1 }
 0x216   :  { %293 = vsyncpa [#allocation6], 1 }
 0x217   :  { %294 = vsyncpa [#allocation4], 1 }

</bundles_post_ra>
